<compile_context>
chip_gen: v7x
topology: tpu7x:2x2x1
jax: 0.10.0
libtpu: 0.0.40
codegen_flags: <defaults>
</compile_context>

<pallas_src>
import jax
import jax.numpy as jnp
from jax.experimental import pallas as pl
from jax.experimental.pallas import tpu as pltpu


def _return_param_kernel(w_ref, o_ref):
    # Identity on the scalar path: forward() == w. SMEM refs, scalar load/store.
    o_ref[0] = w_ref[0]


@jax.jit
def simple_model_forward(w: jax.Array) -> jax.Array:
    """Equivalent of SimpleModel.forward(): returns the parameter w (shape (1,))."""
    return pl.pallas_call(
        _return_param_kernel,
        out_shape=jax.ShapeDtypeStruct(w.shape, w.dtype),
        # Whole (1,) array placed in SMEM: scalar path, no vreg / masked-store traffic.
        in_specs=[pl.BlockSpec(memory_space=pltpu.SMEM)],
        out_specs=pl.BlockSpec(memory_space=pltpu.SMEM),
        # Output aliases the parameter buffer: no new HBM allocation / writeback.
        input_output_aliases={0: 0},
        # Tell XLA this op is negligible so it can schedule/overlap it freely.
        cost_estimate=pl.CostEstimate(flops=0, transcendentals=0, bytes_accessed=8),
    )(w)


if __name__ == "__main__":
    # Deterministic parameter init mirroring torch.nn.Parameter(torch.randn(1)).
    key = jax.random.PRNGKey(0)
    w = jax.random.normal(key, (1,), dtype=jnp.float32)

    out = simple_model_forward(w)
    out = jax.block_until_ready(out)

    assert out.shape == (1,)
    assert out.dtype == jnp.float32
    assert bool(jnp.allclose(out, w)), "kernel output does not match parameter"

    print("KERNEL_OK")
</pallas_src>

<mosaic_0001>
module attributes {stable_mosaic.version = 11 : i64} {
  func.func @_return_param_kernel(%arg0: memref<1xf32, #tpu.memory_space<smem>>, %arg1: memref<1xf32, #tpu.memory_space<smem>>) attributes {dimension_semantics = [], scalar_prefetch = 0 : i64, scratch_operands = 0 : i64, tpu.core_type = #tpu.core_type<tc>} {
    %c0 = arith.constant 0 : index
    %0 = memref.load %arg0[%c0] : memref<1xf32, #tpu.memory_space<smem>>
    %c0_0 = arith.constant 0 : index
    %1 = memref.load %arg1[%c0_0] : memref<1xf32, #tpu.memory_space<smem>>
    memref.store %0, %arg1[%c0_0] : memref<1xf32, #tpu.memory_space<smem>>
    return
  }
}

</mosaic_0001>

<bundles_post_ra>
// kernel: simple_model_forward.1
= control target key start
LH: loop header
LB: loop body
LE: loop exit
PB: predicated region body
PF: predicated region fallthrough
CT: control target
= control target key end

     0   :  { %7 = vsyncpa [#allocation4], 0  ;;  %s65_s0 = inlined_call_operand.<no memory space> [shape: f32[1], index: 0, kind: input, shape index: {}, may-alias: {0,1}]   ;;  %s66_s1 = inlined_call_operand.hbm [shape: f32[1], index: 1, kind: output, shape index: {}, may-alias: {0,1}]  }
   0x1   :  { %12 = sst [smem:[#allocation3]] %s65_s0  ;;  %s27_s10 = scalar_lea.hbm %s66_s1, 16 }
   0x2   :  { %p28_p0 = scmp.ne.s32.totalorder %s66_s1, %s27_s10  ;;  %p31_p1 = scmp.lt.u32.totalorder %s27_s10, %s66_s1 }
   0x4   :  { %p33_p2 = pnand %p31_p1, %p28_p0 }
   0x6   :  { %36 = shalt.err (!%p33_p2)
}
   0x7   :  { %s39_s15 = smov [#allocation3]  }
   0x8   :  { %20 = dma.smem_to_hbm %s39_s15, 16, %s66_s1, [#allocation4]  }
   0x9   :  { %37 = dma.done.wait [#allocation4], 16  }
   0xa   :  { %38 = vsyncadd [#allocation4], 4294967280 }
   0xb   :  { %24 = sfence }
   0xc   :  { %25 = vsyncpa [#allocation4], 1 }

</bundles_post_ra>
